<compile_context>
chip_gen: v6e
topology: v6e:2x2x1
jax: 0.10.0
libtpu: 0.0.40
codegen_flags: <defaults>
</compile_context>

<pallas_src>
import functools
import math

import jax
import jax.numpy as jnp
from jax import lax
from jax.experimental import pallas as pl
from jax.experimental.pallas import tpu as pltpu


# --------------------------- generation-dependent knobs --------------------------- #
def _tpu_params():
    """Returns (vmem_limit_bytes, tq_cap, tkv_cap, exp_dtype) per TPU generation."""
    kind = ""
    try:
        kind = jax.devices()[0].device_kind.lower()
    except Exception:
        pass
    vmem_phys = None
    try:
        vmem_phys = int(pltpu.get_tpu_info().vmem_capacity_bytes)
    except Exception:
        pass
    if vmem_phys is None:
        # Heuristic fallback: v7x has 64 MiB per TensorCore, v5e/v6e have 128 MiB.
        vmem_phys = 64 * 1024 * 1024 if "v7" in kind else 128 * 1024 * 1024
    # Leave headroom for Mosaic-internal scratch / semaphores (critical on v7x).
    vmem_limit = min(int(vmem_phys * 3 // 4), 112 * 1024 * 1024)
    if vmem_phys >= 96 * 1024 * 1024:     # v5e / v6e (128 MiB): bigger q tiles.
        tq_cap, tkv_cap = 512, 512
    else:                                  # v7x (64 MiB): keep q tiles smaller.
        tq_cap, tkv_cap = 256, 512
    # bf16 EUP exponentials exist on v6e/v7x; v5-generation only has the f32 path.
    exp_dtype = jnp.float32 if "v5" in kind else jnp.bfloat16
    return vmem_limit, tq_cap, tkv_cap, exp_dtype


def _pick_tile(n, cap):
    """Largest tile <= cap that divides n and is a multiple of 8 (or n itself)."""
    if n <= cap:
        return n
    t = (cap // 8) * 8
    while t >= 8:
        if n % t == 0:
            return t
        t -= 8
    return n


def _k1_row_tile(rows, C, vmem_limit):
    cap = 512
    weight_bytes = 2 * C * (3 * C)   # resident bf16 (C, 3C) weight
    # x tile (bf16, 2 buffers) + 3 bf16 output tiles (2 buffers each) = 16*tm*C bytes
    while cap > 64 and weight_bytes + 16 * cap * C > int(vmem_limit * 0.8):
        cap //= 2
    return _pick_tile(rows, cap)


def _k2_tiles(N, C, vmem_limit, tq_cap, tkv_cap):
    budget = int(vmem_limit * 0.8)
    wp_bytes = 2 * C * C             # resident bf16 proj weight

    def footprint(tq, tkv):
        q_b = 2 * tq * C * 2         # q tile bf16, double-buffered
        kv_b = 2 * 2 * tkv * C * 2   # k + v tiles bf16, double-buffered
        out_b = 2 * tq * C * 4       # f32 output tile, double-buffered
        acc_b = tq * C * 4           # f32 accumulator scratch
        ml_b = 2 * tq * 128 * 4      # m/l scratch (lanes pad to 128)
        return wp_bytes + q_b + kv_b + out_b + acc_b + ml_b

    tq, tkv = tq_cap, tkv_cap
    while footprint(tq, tkv) > budget and (tq > 64 or tkv > 64):
        if tkv >= tq and tkv > 64:
            tkv //= 2                # shrink kv tile first: tq controls K/V rereads
        elif tq > 64:
            tq //= 2
        else:
            break
    return _pick_tile(N, tq), _pick_tile(N, tkv)


# ----------------------------- kernel 1: QKV projection ----------------------------- #
def _qkv_proj_kernel(x_ref, wqkv_ref, q_ref, k_ref, v_ref, *, C, scale):
    # x_ref:     (tm, C)   bf16 rows of the flattened (B*N, C) input
    # wqkv_ref:  (C, 3C)   input-major bf16 weight (pre-transposed in wrapper)
    # q/k/v_ref: (tm, C)   bf16 outputs; q is pre-scaled by head_dim**-0.5
    qkv = jnp.dot(x_ref[...], wqkv_ref[...],
                  preferred_element_type=jnp.float32)             # (tm, 3C) f32
    q_ref[...] = (qkv[:, 0:C] * scale).astype(q_ref.dtype)
    k_ref[...] = qkv[:, C:2 * C].astype(k_ref.dtype)
    v_ref[...] = qkv[:, 2 * C:3 * C].astype(v_ref.dtype)


# ------------------- kernel 2: flash attention + output projection ------------------ #
def _flash_attn_proj_kernel(q_ref, k_ref, v_ref, wp_ref, bp_ref, o_ref,
                            m_sc, l_sc, acc_sc, *, num_heads, head_dim, exp_dtype):
    # q_ref:   (tq, C)   bf16, already scaled
    # k_ref:   (tkv, C)  bf16
    # v_ref:   (tkv, C)  bf16
    # wp_ref:  (C, C)    bf16 input-major proj weight
    # bp_ref:  (1, C)    f32 proj bias
    # o_ref:   (tq, C)   output block (resident across the kv grid axis)
    # m_sc/l_sc: (tq, H) f32 running max / running sum (lane-dense)
    # acc_sc:    (tq, C) f32 unnormalized PV accumulator (lane-dense)
    kv = pl.program_id(2)

    @pl.when(kv == 0)
    def _init():
        m_sc[...] = jnp.full(m_sc.shape, -jnp.inf, dtype=m_sc.dtype)
        l_sc[...] = jnp.zeros(l_sc.shape, dtype=l_sc.dtype)
        acc_sc[...] = jnp.zeros(acc_sc.shape, dtype=acc_sc.dtype)

    q = q_ref[...]          # (tq, C)  bf16
    k = k_ref[...]          # (tkv, C) bf16
    v = v_ref[...]          # (tkv, C) bf16

    for h in range(num_heads):
        lo = h * head_dim
        qh = q[:, lo:lo + head_dim]          # (tq, D)
        kh = k[:, lo:lo + head_dim]          # (tkv, D)
        vh = v[:, lo:lo + head_dim]          # (tkv, D)

        # scores: contract on D for both operands -> no (N,D)->(D,N) transpose.
        s = lax.dot_general(qh, kh, (((1,), (1,)), ((), ())),
                            preferred_element_type=jnp.float32)   # (tq, tkv) f32

        m_prev = m_sc[:, h:h + 1]                                  # (tq, 1)
        m_new = jnp.maximum(m_prev, jnp.max(s, axis=-1, keepdims=True))
        alpha = jnp.exp(m_prev - m_new)                            # (tq, 1) f32
        # bf16 exponentials on v6e/v7x (EUP bf16 path), f32 on v5e.
        p = jnp.exp((s - m_new).astype(exp_dtype))                 # (tq, tkv)
        l_sc[:, h:h + 1] = alpha * l_sc[:, h:h + 1] + jnp.sum(
            p.astype(jnp.float32), axis=-1, keepdims=True)
        pv = jnp.dot(p.astype(jnp.bfloat16), vh,
                     preferred_element_type=jnp.float32)           # (tq, D) f32
        acc_sc[:, lo:lo + head_dim] = alpha * acc_sc[:, lo:lo + head_dim] + pv
        m_sc[:, h:h + 1] = m_new

    @pl.when(kv == pl.num_programs(2) - 1)
    def _finalize():
        # Normalize each head (EUP approx reciprocal) into a lane-dense (tq, C)
        # bf16 context, then ONE full-depth (tq, C) @ (C, C) output projection.
        parts = []
        for h in range(num_heads):
            lo = h * head_dim
            inv_l = pl.reciprocal(l_sc[:, h:h + 1], approx=True)   # (tq, 1)
            parts.append((acc_sc[:, lo:lo + head_dim] * inv_l).astype(jnp.bfloat16))
        ctx = parts[0] if num_heads == 1 else jnp.concatenate(parts, axis=-1)
        out = jnp.dot(ctx, wp_ref[...], preferred_element_type=jnp.float32)
        o_ref[...] = (out + bp_ref[...]).astype(o_ref.dtype)


# ------------------------------------ wrapper ---------------------------------------- #
def attention_forward(x, w_qkv, w_proj, b_proj, *, num_heads):
    """x: (B, N, C) float32.  w_qkv: (3C, C), w_proj: (C, C), b_proj: (C,)
    (PyTorch nn.Linear layouts).  Returns (B, N, C)."""
    B, N, C = x.shape
    assert C % num_heads == 0
    head_dim = C // num_heads
    scale = head_dim ** -0.5

    vmem_limit, tq_cap, tkv_cap, exp_dtype = _tpu_params()

    # One-time setup: input-major bf16 weights, f32 bias as (1, C).
    w_qkv_t = w_qkv.T.astype(jnp.bfloat16)          # (C, 3C)
    w_proj_t = w_proj.T.astype(jnp.bfloat16)        # (C, C)
    b_proj_2d = b_proj.astype(jnp.float32).reshape(1, C)

    # ---------------- kernel 1: QKV projection ----------------
    rows = B * N
    tm = _k1_row_tile(rows, C, vmem_limit)
    assert rows % tm == 0, "wrapper assumes B*N divisible by the row tile"
    # bf16 activations at the HBM boundary: less kernel-1 read traffic (in a full
    # model the producing layer would already emit bf16).
    x2d = x.reshape(rows, C).astype(jnp.bfloat16)

    k1 = functools.partial(_qkv_proj_kernel, C=C, scale=scale)
    q2d, k2d, v2d = pl.pallas_call(
        k1,
        out_shape=(
            jax.ShapeDtypeStruct((rows, C), jnp.bfloat16),
            jax.ShapeDtypeStruct((rows, C), jnp.bfloat16),
            jax.ShapeDtypeStruct((rows, C), jnp.bfloat16),
        ),
        grid_spec=pltpu.PrefetchScalarGridSpec(
            num_scalar_prefetch=0,
            grid=(rows // tm,),
            in_specs=[
                pl.BlockSpec((tm, C), lambda i: (i, 0)),
                pl.BlockSpec((C, 3 * C), lambda i: (0, 0)),
            ],
            out_specs=(
                pl.BlockSpec((tm, C), lambda i: (i, 0)),
                pl.BlockSpec((tm, C), lambda i: (i, 0)),
                pl.BlockSpec((tm, C), lambda i: (i, 0)),
            ),
        ),
        compiler_params=pltpu.CompilerParams(
            dimension_semantics=("parallel",),
            vmem_limit_bytes=vmem_limit),
    )(x2d, w_qkv_t)

    q = q2d.reshape(B, N, C)
    k = k2d.reshape(B, N, C)
    v = v2d.reshape(B, N, C)

    # -------- kernel 2: flash attention + output projection --------
    tq, tkv = _k2_tiles(N, C, vmem_limit, tq_cap, tkv_cap)
    assert N % tq == 0 and N % tkv == 0, "wrapper assumes N divisible by tiles"

    k2 = functools.partial(_flash_attn_proj_kernel, num_heads=num_heads,
                           head_dim=head_dim, exp_dtype=exp_dtype)
    out = pl.pallas_call(
        k2,
        out_shape=jax.ShapeDtypeStruct((B, N, C), x.dtype),
        grid_spec=pltpu.PrefetchScalarGridSpec(
            num_scalar_prefetch=0,
            grid=(B, N // tq, N // tkv),
            in_specs=[
                pl.BlockSpec((None, tq, C), lambda b, qi, kv: (b, qi, 0)),   # q tile
                pl.BlockSpec((None, tkv, C), lambda b, qi, kv: (b, kv, 0)),  # k tile
                pl.BlockSpec((None, tkv, C), lambda b, qi, kv: (b, kv, 0)),  # v tile
                pl.BlockSpec((C, C), lambda b, qi, kv: (0, 0)),              # proj weight
                pl.BlockSpec((1, C), lambda b, qi, kv: (0, 0)),              # proj bias
            ],
            out_specs=pl.BlockSpec((None, tq, C), lambda b, qi, kv: (b, qi, 0)),
            scratch_shapes=[
                pltpu.VMEM((tq, num_heads), jnp.float32),   # running max m (lane-dense)
                pltpu.VMEM((tq, num_heads), jnp.float32),   # running sum l (lane-dense)
                pltpu.VMEM((tq, C), jnp.float32),           # PV accumulator (lane-dense)
            ],
        ),
        compiler_params=pltpu.CompilerParams(
            dimension_semantics=("parallel", "parallel", "arbitrary"),
            vmem_limit_bytes=vmem_limit),
    )(q, k, v, w_proj_t, b_proj_2d)
    return out


def attention_reference(x, w_qkv, w_proj, b_proj, *, num_heads):
    """Pure-JAX reference mirroring the PyTorch forward exactly (all f32)."""
    B, N, C = x.shape
    head_dim = C // num_heads
    scale = head_dim ** -0.5
    qkv = x @ w_qkv.T                                             # (B, N, 3C)
    qkv = qkv.reshape(B, N, 3, num_heads, head_dim).transpose(2, 0, 3, 1, 4)
    q, k, v = qkv[0], qkv[1], qkv[2]                              # (B, H, N, D)
    q = q * scale
    attn = q @ jnp.swapaxes(k, -2, -1)                            # (B, H, N, N)
    attn = jax.nn.softmax(attn, axis=-1)
    out = attn @ v                                                # (B, H, N, D)
    out = out.transpose(0, 2, 1, 3).reshape(B, N, C)
    return out @ w_proj.T + b_proj


if __name__ == "__main__":
    B, N, C = 2, 16, 32
    num_heads = 4

    key = jax.random.PRNGKey(0)
    kx, kqkv, kproj, kb = jax.random.split(key, 4)

    x = jax.random.normal(kx, (B, N, C), dtype=jnp.float32)
    # deterministic "init" matching nn.Linear shapes: qkv (3C, C) no bias, proj (C, C) + bias
    bound = 1.0 / math.sqrt(C)
    w_qkv = jax.random.uniform(kqkv, (3 * C, C), minval=-bound, maxval=bound,
                               dtype=jnp.float32)
    w_proj = jax.random.uniform(kproj, (C, C), minval=-bound, maxval=bound,
                                dtype=jnp.float32)
    b_proj = jax.random.uniform(kb, (C,), minval=-bound, maxval=bound,
                                dtype=jnp.float32)

    out = attention_forward(x, w_qkv, w_proj, b_proj, num_heads=num_heads)
    out = jax.block_until_ready(out)

    ref = attention_reference(x, w_qkv, w_proj, b_proj, num_heads=num_heads)
    assert out.shape == (B, N, C)
    max_err = jnp.max(jnp.abs(out - ref))
    # bf16 MXU inputs (and bf16 exp on v6e/v7x) with f32 accumulation.
    assert jnp.allclose(out, ref, atol=5e-2, rtol=5e-2), f"max abs err {max_err}"

    print("KERNEL_OK")
</pallas_src>

<mosaic_0001>
module attributes {stable_mosaic.version = 11 : i64} {
  func.func @_qkv_proj_kernel(%arg0: i32, %arg1: memref<32x32xbf16, #tpu.memory_space<vmem>>, %arg2: memref<32x96xbf16, #tpu.memory_space<vmem>>, %arg3: memref<32x32xbf16, #tpu.memory_space<vmem>>, %arg4: memref<32x32xbf16, #tpu.memory_space<vmem>>, %arg5: memref<32x32xbf16, #tpu.memory_space<vmem>>) attributes {dimension_semantics = [#tpu.dimension_semantics<parallel>], iteration_bounds = array<i64: 1>, scalar_prefetch = 0 : i64, scratch_operands = 0 : i64, tpu.core_type = #tpu.core_type<tc>, window_params = [{transform_indices = @transform_0, window_bounds = array<i64: 32, 32>}, {pipeline_mode = #tpu.pipeline_mode<synchronous>, transform_indices = @transform_1, window_bounds = array<i64: 32, 96>}, {transform_indices = @transform_2, window_bounds = array<i64: 32, 32>}, {transform_indices = @transform_3, window_bounds = array<i64: 32, 32>}, {transform_indices = @transform_4, window_bounds = array<i64: 32, 32>}]} {
    %c0 = arith.constant 0 : index
    %c0_0 = arith.constant 0 : index
    %0 = vector.load %arg1[%c0, %c0_0] : memref<32x32xbf16, #tpu.memory_space<vmem>>, vector<32x32xbf16>
    %c0_1 = arith.constant 0 : index
    %c0_2 = arith.constant 0 : index
    %1 = vector.load %arg2[%c0_1, %c0_2] : memref<32x96xbf16, #tpu.memory_space<vmem>>, vector<32x96xbf16>
    %cst = arith.constant dense<0.000000e+00> : vector<32x96xf32>
    %2 = tpu.matmul %0, %1, %cst {dimension_numbers = #tpu.dot_dimension_numbers<[1], [0], [0], [1], [0, 0, 1, 1], [], []>} : vector<32x32xbf16>, vector<32x96xbf16>, vector<32x96xf32> -> vector<32x96xf32>
    %3 = vector.extract_strided_slice %2 {offsets = [0, 0], sizes = [32, 32], strides = [1, 1]} : vector<32x96xf32> to vector<32x32xf32>
    %cst_3 = arith.constant 0.353553385 : f32
    %4 = vector.broadcast %cst_3 : f32 to vector<32x32xf32>
    %5 = arith.mulf %3, %4 : vector<32x32xf32>
    %6 = arith.truncf %5 : vector<32x32xf32> to vector<32x32xbf16>
    %c0_4 = arith.constant 0 : index
    %c0_5 = arith.constant 0 : index
    %7 = vector.load %arg3[%c0_4, %c0_5] : memref<32x32xbf16, #tpu.memory_space<vmem>>, vector<32x32xbf16>
    tpu.vector_store %arg3[%c0_4, %c0_5], %6 {strides = array<i32>} : memref<32x32xbf16, #tpu.memory_space<vmem>>, vector<32x32xbf16>,
    %8 = vector.extract_strided_slice %2 {offsets = [0, 32], sizes = [32, 32], strides = [1, 1]} : vector<32x96xf32> to vector<32x32xf32>
    %9 = arith.truncf %8 : vector<32x32xf32> to vector<32x32xbf16>
    %c0_6 = arith.constant 0 : index
    %c0_7 = arith.constant 0 : index
    %10 = vector.load %arg4[%c0_6, %c0_7] : memref<32x32xbf16, #tpu.memory_space<vmem>>, vector<32x32xbf16>
    tpu.vector_store %arg4[%c0_6, %c0_7], %9 {strides = array<i32>} : memref<32x32xbf16, #tpu.memory_space<vmem>>, vector<32x32xbf16>,
    %11 = vector.extract_strided_slice %2 {offsets = [0, 64], sizes = [32, 32], strides = [1, 1]} : vector<32x96xf32> to vector<32x32xf32>
    %12 = arith.truncf %11 : vector<32x32xf32> to vector<32x32xbf16>
    %c0_8 = arith.constant 0 : index
    %c0_9 = arith.constant 0 : index
    %13 = vector.load %arg5[%c0_8, %c0_9] : memref<32x32xbf16, #tpu.memory_space<vmem>>, vector<32x32xbf16>
    tpu.vector_store %arg5[%c0_8, %c0_9], %12 {strides = array<i32>} : memref<32x32xbf16, #tpu.memory_space<vmem>>, vector<32x32xbf16>,
    return
  }
  func.func @transform_0(%arg0: i32) -> (i32, i32) {
    %c0_i32 = arith.constant 0 : i32
    %c0_i32_0 = arith.constant 0 : i32
    return %arg0, %c0_i32 : i32, i32
  }
  func.func @transform_1(%arg0: i32) -> (i32, i32) {
    %c0_i32 = arith.constant 0 : i32
    %c0_i32_0 = arith.constant 0 : i32
    %c0_i32_1 = arith.constant 0 : i32
    return %c0_i32, %c0_i32_0 : i32, i32
  }
  func.func @transform_2(%arg0: i32) -> (i32, i32) {
    %c0_i32 = arith.constant 0 : i32
    %c0_i32_0 = arith.constant 0 : i32
    return %arg0, %c0_i32 : i32, i32
  }
  func.func @transform_3(%arg0: i32) -> (i32, i32) {
    %c0_i32 = arith.constant 0 : i32
    %c0_i32_0 = arith.constant 0 : i32
    return %arg0, %c0_i32 : i32, i32
  }
  func.func @transform_4(%arg0: i32) -> (i32, i32) {
    %c0_i32 = arith.constant 0 : i32
    %c0_i32_0 = arith.constant 0 : i32
    return %arg0, %c0_i32 : i32, i32
  }
}

</mosaic_0001>

<bundles_post_ra>
// kernel: tpu_custom_call.1
= control target key start
LH: loop header
LB: loop body
LE: loop exit
PB: predicated region body
PF: predicated region fallthrough
CT: control target
= control target key end

     0   :  { %10 = vsyncpa [#allocation3], 0  ;;  %s486_s0 = inlined_call_operand.hbm [shape: bf16[32,32], index: 0, kind: input, shape index: {}]   ;;  %s487_s1 = inlined_call_operand.hbm [shape: bf16[32,96], index: 1, kind: input, shape index: {}]   ;;  %s488_s2 = inlined_call_operand.hbm [shape: bf16[32,32], index: 2, kind: output, shape index: {0}]   ;;  %s489_s3 = inlined_call_operand.hbm [shape: bf16[32,32], index: 3, kind: output, shape index: {1}]   ;;  %s490_s4 = inlined_call_operand.hbm [shape: bf16[32,32], index: 4, kind: output, shape index: {2}]  }
   0x1   :  { %11 = vsyncpa [#allocation6], 0 }
   0x2   :  { %12 = vsyncpa [#allocation4], 0 }
   0x3   :  { %13 = vsyncpa [#allocation9], 0  ;;  %s403_s15 = smov [#allocation2]  }
   0x4   :  { %s19_s16 = sshll.u32 %s403_s15, 4  ;;  %s20_s16 = int_to_ptr.vmem [resolvable:$true] %s19_s16 }
   0x5   :  { %s303_s17 = scalar_lea.vmem %s20_s16, 256  ;;  %p308_p1 = scmp.lt.s32.totalorder %s20_s16, %s20_s16 }
   0x6   :  { %p304_p0 = scmp.ne.s32.totalorder %s20_s16, %s303_s17  ;;  %p309_p2 = scmp.lt.s32.totalorder %s303_s17, %s303_s17 }
   0x8   :  { %p310_p3 = por %p309_p2, %p308_p1 }
   0xa   :  { %p311_p4 = pnand %p310_p3, %p304_p0 }
   0xc   :  { %314 = shalt.err (!%p311_p4)
}
   0xd   :  { %s404_s18 = smov 64   ;;  %s405_s19 = smov 4  }
   0xe   :  { %25 = dma.hbm_to_vmem [thread:$0]  %s486_s0, 256, %s20_s16, [#allocation3], %s404_s18, %s404_s18, %s405_s19  }
   0xf   :  { %s406_s22 = smov [#allocation5]  }
  0x10   :  { %s31_s23 = sshll.u32 %s406_s22, 4  ;;  %s32_s23 = int_to_ptr.vmem [resolvable:$true] %s31_s23 }
  0x11   :  { %s323_s24 = scalar_lea.vmem %s32_s23, 256  ;;  %p328_p6 = scmp.lt.s32.totalorder %s32_s23, %s32_s23 }
  0x12   :  { %p324_p5 = scmp.ne.s32.totalorder %s32_s23, %s323_s24  ;;  %p329_p7 = scmp.lt.s32.totalorder %s323_s24, %s323_s24 }
  0x14   :  { %p330_p8 = por %p329_p7, %p328_p6 }
  0x16   :  { %p331_p9 = pnand %p330_p8, %p324_p5 }
  0x18   :  { %334 = shalt.err (!%p331_p9)
}
  0x19   :  { %37 = dma.hbm_to_vmem [thread:$0]  %s487_s1, 256, %s32_s23, [#allocation6], %s404_s18, %s404_s18, %s405_s19  }
  0x1a   :  { %395 = dma.done.wait [#allocation3], 256  }
  0x1b   :  { %396 = vsyncadd [#allocation3], 4294967040 }
  0x1c   :  { %397 = dma.done.wait [#allocation6], 256  }
  0x1d   :  { %398 = vsyncadd [#allocation6], 4294967040  ;;  %v291_v0 = vld [vmem:[#allocation5 + $0x8] sm:$0xff]   ;;  %v292_v1 = vld [vmem:[#allocation5] sm:$0xff]   ;;  %vm75_vm0 = vcmask 261120   ;;  %vm151_vm1 = vcmask 257024  }
  0x1e   :  { %275 = vmatprep.subr.bf16.mxu0 %v291_v0  ;;  %v293_v2 = vld [vmem:[#allocation2] sm:$0xff]   ;;  %v294_v3 = vld [vmem:[#allocation2 + $0x8] sm:$0xff]   ;;  %s407_s0 = smov 96   ;;  %s408_s1 = smov [#allocation7]  }
  0x1f   :  { %276 = vmatpush3.bf16.msra.mxu0 %v291_v0  ;;  %279 = vmatprep.mubr.msk.bf16.mxu0 %vm75_vm0, %v293_v2  ;;  %s205_s27 = sshll.u32 %s408_s1, 4  ;;  %s206_s27 = int_to_ptr.vmem [resolvable:$true] %s205_s27 }
  0x20   :  { %277 = vmatprep.subr.bf16.mxu0 %v292_v1  ;;  %s335_s28 = scalar_lea.vmem %s206_s27, 256  ;;  %p340_p11 = scmp.lt.s32.totalorder %s206_s27, %s206_s27 }
  0x21   :  { %p336_p10 = scmp.ne.s32.totalorder %s206_s27, %s335_s28  ;;  %p341_p12 = scmp.lt.s32.totalorder %s335_s28, %s335_s28 }
  0x23   :  { %278 = vmatpush3.bf16.msra.mxu0 %v292_v1  ;;  %p342_p13 = por %p341_p12, %p340_p11 }
  0x25   :  { %p343_p0 = pnand %p342_p13, %p336_p10 }
  0x26   :  { %280 = vmatmul.mubr.msk.bf16.vlgmr.msra.gmra.mxu0 %vm75_vm0, %v294_v3 }
  0xe6   :  { %v281_v4 = vpop.f32.mrf.mxu0 }
  0xe7   :  { %v133_v5 = vmul.f32 0.35355338, %v281_v4  ;;  %v269_v6 = vpack.c.bf16 %v281_v4, %v281_v4 }
  0xe8   :  { %v116_v7 = vpop.f32.mrf.mxu0 }
  0xe9   :  { %v265_v8 = vpack.c.bf16 %v133_v5, %v133_v5  ;;  %v131_v9 = vmul.f32 0.35355338, %v116_v7  ;;  %172 = vrot.lane.b32.xlu1 %v269_v6, %s407_s0  ;;  %v267_v10 = vpack.c.bf16 %v116_v7, %v116_v7 }
  0xea   :  { %v282_v11 = vpop.f32.mrf.mxu0 }
  0xeb   :  { %154 = vst.msk [vmem:[#allocation7 + $0x8] sm:$0xf] %vm151_vm1, %v265_v8  ;;  %v263_v12 = vpack.c.bf16 %v131_v9, %v131_v9  ;;  %v134_v13 = vmul.f32 0.35355338, %v282_v11  ;;  %v270_v14 = vpack.c.bf16 %v282_v11, %v282_v11  ;;  %168 = vrot.lane.b32.xlu0 %v267_v10, %s407_s0 }
  0xec   :  { %v119_v15 = vpop.f32.mrf.mxu0 }
  0xed   :  { %152 = vst.msk [vmem:[#allocation7] sm:$0xf] %vm151_vm1, %v263_v12  ;;  %v266_v16 = vpack.c.bf16 %v134_v13, %v134_v13  ;;  %v132_v17 = vmul.f32 0.35355338, %v119_v15  ;;  %174 = vrot.lane.b32.xlu1 %v270_v14, %s407_s0  ;;  %v268_v19 = vpack.c.bf16 %v119_v15, %v119_v15 }
  0xef   :  { %155 = vst.msk [vmem:[#allocation7 + $0xc] sm:$0xf] %vm151_vm1, %v266_v16  ;;  %v264_v18 = vpack.c.bf16 %v132_v17, %v132_v17  ;;  %184 = vrot.lane.b32.xlu0 %v267_v10, %s404_s18 }
  0xf1   :  { %153 = vst.msk [vmem:[#allocation7 + $0x4] sm:$0xf] %vm151_vm1, %v264_v18  ;;  %186 = vrot.lane.b32.xlu1 %v268_v19, %s404_s18 }
  0xf2   :  { %346 = shalt.err (!%p343_p0)
}
  0xf3   :  { %211 = dma.vmem_to_hbm [thread:$0]  %s206_s27, 256, %s488_s2, [#allocation4], %s404_s18, %s404_s18, %s405_s19  }
  0xf4   :  { %170 = vrot.lane.b32.xlu0 %v268_v19, %s407_s0  ;;  %s409_s5 = smov [#allocation8]   ;;  %s410_s2 = smov [#allocation10]  }
  0xf5   :  { %190 = vrot.lane.b32.xlu1 %v270_v14, %s404_s18  ;;  %s217_s6 = sshll.u32 %s409_s5, 4  ;;  %s229_s7 = sshll.u32 %s410_s2, 4  ;;  %s218_s6 = int_to_ptr.vmem [resolvable:$true] %s217_s6  ;;  %s230_s7 = int_to_ptr.vmem [resolvable:$true] %s229_s7 }
  0xf6   :  { %s355_s8 = scalar_lea.vmem %s218_s6, 256  ;;  %p360_p2 = scmp.lt.s32.totalorder %s218_s6, %s218_s6 }
  0xf7   :  { %p356_p1 = scmp.ne.s32.totalorder %s218_s6, %s355_s8  ;;  %p361_p3 = scmp.lt.s32.totalorder %s355_s8, %s355_s8 }
  0xf8   :  { %188 = vrot.lane.b32.xlu0 %v269_v6, %s404_s18 }
  0xf9   :  { %p362_p4 = por %p361_p3, %p360_p2 }
  0xfb   :  { %p363_p5 = pnand %p362_p4, %p356_p1 }
 0x15b   :  { %v173_v20 = vpop.permute.xlu1 %172 }
 0x15c   :  { %182 = vst.msk [vmem:[#allocation8 + $0x8] sm:$0xf] %vm151_vm1, %v173_v20 }
 0x15d   :  { %v169_v21 = vpop.permute.xlu0 %168 }
 0x15e   :  { %180 = vst.msk [vmem:[#allocation8] sm:$0xf] %vm151_vm1, %v169_v21 }
 0x15f   :  { %v175_v22 = vpop.permute.xlu1 %174 }
 0x160   :  { %183 = vst.msk [vmem:[#allocation8 + $0xc] sm:$0xf] %vm151_vm1, %v175_v22 }
 0x161   :  { %v185_v23 = vpop.permute.xlu0 %184 }
 0x162   :  { %196 = vst.msk [vmem:[#allocation10] sm:$0xf] %vm151_vm1, %v185_v23 }
 0x163   :  { %v187_v24 = vpop.permute.xlu1 %186 }
 0x164   :  { %197 = vst.msk [vmem:[#allocation10 + $0x4] sm:$0xf] %vm151_vm1, %v187_v24 }
 0x166   :  { %v171_v25 = vpop.permute.xlu0 %170 }
 0x167   :  { %181 = vst.msk [vmem:[#allocation8 + $0x4] sm:$0xf] %vm151_vm1, %v171_v25  ;;  %v191_v26 = vpop.permute.xlu1 %190 }
 0x168   :  { %366 = shalt.err (!%p363_p5)
}
 0x169   :  { %223 = dma.vmem_to_hbm [thread:$0]  %s218_s6, 256, %s489_s3, [#allocation9], %s404_s18, %s404_s18, %s405_s19   ;;  %199 = vst.msk [vmem:[#allocation10 + $0xc] sm:$0xf] %vm151_vm1, %v191_v26 }
 0x16a   :  { %v189_v27 = vpop.permute.xlu0 %188  ;;  %s375_s11 = scalar_lea.vmem %s230_s7, 256  ;;  %p380_p7 = scmp.lt.s32.totalorder %s230_s7, %s230_s7 }
 0x16b   :  { %198 = vst.msk [vmem:[#allocation10 + $0x8] sm:$0xf] %vm151_vm1, %v189_v27  ;;  %p376_p6 = scmp.ne.s32.totalorder %s230_s7, %s375_s11  ;;  %p381_p8 = scmp.lt.s32.totalorder %s375_s11, %s375_s11 }
 0x16d   :  { %p382_p9 = por %p381_p8, %p380_p7 }
 0x16f   :  { %p383_p10 = pnand %p382_p9, %p376_p6 }
 0x171   :  { %386 = shalt.err (!%p383_p10)
}
 0x172   :  { %235 = dma.vmem_to_hbm [thread:$0]  %s230_s7, 256, %s490_s4, [#allocation9], %s404_s18, %s404_s18, %s405_s19  }
 0x173   :  { %399 = dma.done.wait [#allocation4], 256  }
 0x174   :  { %400 = vsyncadd [#allocation4], 4294967040 }
 0x175   :  { %401 = dma.done.wait [#allocation9], 512  }
 0x176   :  { %402 = vsyncadd [#allocation9], 4294966784 }
 0x177   :  { %245 = vsyncpa [#allocation3], 1 }
 0x178   :  { %246 = vsyncpa [#allocation6], 1 }
 0x179   :  { %247 = vsyncpa [#allocation4], 1 }
 0x17a   :  { %248 = vsyncpa [#allocation9], 1 }

</bundles_post_ra>
